<compile_context>
chip_gen: v7x
topology: tpu7x:2x2x1
jax: 0.10.0
libtpu: 0.0.40
codegen_flags: <defaults>
</compile_context>

<pallas_src>
import jax
import jax.numpy as jnp
from jax import lax
from jax.experimental import pallas as pl
from jax.experimental.pallas import tpu as pltpu

LANE = 128          # TPU lane width
LC = 16             # time sub-chunk length for the stabilized matmul scan
_NEG = -1e30        # "-inf" sentinel that stays NaN-free through logaddexp


def _round_up(x, m):
    return (x + m - 1) // m * m


# ----------------------------- Pallas kernel -------------------------------
def _make_mingru_kernel(l_actual, lc, n_chunks):
    """Kernel for one (direction, lane-block). Refs are (Lp, CB) float32."""

    def kernel(h_ref, g_ref, o_ref):
        cb = h_ref.shape[-1]
        # grid axis 0: 0 = forward (prefix scan), 1 = backward (suffix scan).
        is_fwd = pl.program_id(0) == 0

        # (lc, lc) scan matrix: lower-triangular for prefix, upper for suffix.
        r = lax.broadcasted_iota(jnp.int32, (lc, lc), 0)
        c = lax.broadcasted_iota(jnp.int32, (lc, lc), 1)
        tri = jnp.where(jnp.where(is_fwd, r - c, c - r) >= 0, 1.0, 0.0)

        row_in_chunk = lax.broadcasted_iota(jnp.int32, (lc, 1), 0)

        def body(step, carry):
            carry_a, carry_s = carry                   # (1, cb) carries
            # forward walks chunks 0..n-1, backward walks them n-1..0
            cc = jnp.where(is_fwd, step, (n_chunks - 1) - step)
            start = pl.multiple_of(cc * lc, lc)

            h = h_ref[pl.ds(start, lc), :]
            g = g_ref[pl.ds(start, lc), :]
            valid = (start + row_in_chunk) < l_actual  # (lc, 1) time-padding mask

            # --- elementwise prep on full (lc, cb) tiles (vectorized EUP/VPU) ---
            log_h_tilde = jnp.where(h < 0.0, h, jnp.log1p(jnp.maximum(h, 0.0)))
            sp_t = jnp.log1p(jnp.exp(-jnp.abs(g)))             # log(1 + e^-|g|)
            log_coeffs = -(jnp.maximum(g, 0.0) + sp_t)         # -softplus(g)
            log_values = -(jnp.maximum(-g, 0.0) + sp_t) + log_h_tilde

            # --- within-chunk cumsum of log_coeffs on the MXU ---
            lcf = jnp.where(valid, log_coeffs, 0.0)
            a_loc = jnp.dot(tri, lcf, preferred_element_type=jnp.float32,
                            precision=lax.Precision.HIGHEST)

            # --- within-chunk logcumsumexp(log_values - a_star):
            #     chunk-max stabilized exp, prefix/suffix-sum again on the MXU ---
            w = jnp.where(valid, log_values - a_loc, _NEG)
            m = jnp.max(w, axis=0, keepdims=True)              # (1, cb)
            p = jnp.where(valid, jnp.exp(w - m), 0.0)
            ps = jnp.dot(tri, p, preferred_element_type=jnp.float32,
                         precision=lax.Precision.HIGHEST)
            local_lse = m + jnp.log(ps)

            # --- fold in the carry from previous chunks (one-exp logaddexp) ---
            v_rel = local_lse - carry_a
            mx = jnp.maximum(carry_s, v_rel)
            s_all = mx + jnp.log1p(jnp.exp(-jnp.abs(carry_s - v_rel)))

            # single full-tile exp + unmasked (lc, cb) store
            o_ref[pl.ds(start, lc), :] = jnp.exp(carry_a + a_loc + s_all)

            # carries exit at the last row (forward) / first row (backward)
            a_edge = jnp.where(is_fwd, a_loc[lc - 1:lc, :], a_loc[0:1, :])
            s_edge = jnp.where(is_fwd, s_all[lc - 1:lc, :], s_all[0:1, :])
            return carry_a + a_edge, s_edge

        carry0 = (jnp.zeros((1, cb), jnp.float32),
                  jnp.full((1, cb), _NEG, jnp.float32))
        lax.fori_loop(0, n_chunks, body, carry0)

    return kernel


# ----------------------------- wrapper --------------------------------------
def mingru2_forward(x):
    """minGRU2.forward: x (B, H, L) float32 -> (B, H//2, L) float32."""
    B, H, L = x.shape
    assert H % 4 == 0, "H must be divisible by 4 (two nested chunk(2, dim=1))"
    Hq = H // 4
    C = B * Hq

    Lp = _round_up(L, LC)
    n_chunks = Lp // LC

    # lane-block width: as wide as a modest VMEM budget allows
    Cp0 = _round_up(C, LANE)
    budget = 12 * 1024 * 1024                       # 3 arrays x 2 buffers x Lp x CB x 4B
    cb_cap = max(LANE, (budget // (6 * 4 * Lp)) // LANE * LANE)
    CB = min(Cp0, 2048, cb_cap)
    Cp = _round_up(Cp0, CB)

    def to_lc(a):                                   # (B, Hq, L) -> (Lp, Cp)
        a2 = a.reshape(C, L).T
        return jnp.pad(a2, ((0, Lp - L), (0, Cp - C)))

    # directions stacked on a leading axis; NO flips here (handled in-kernel)
    h3 = jnp.stack([to_lc(x[:, 0 * Hq:1 * Hq]), to_lc(x[:, 2 * Hq:3 * Hq])], axis=0)
    g3 = jnp.stack([to_lc(x[:, 1 * Hq:2 * Hq]), to_lc(x[:, 3 * Hq:4 * Hq])], axis=0)

    kernel = _make_mingru_kernel(L, LC, n_chunks)

    out3 = pl.pallas_call(
        kernel,
        out_shape=jax.ShapeDtypeStruct((2, Lp, Cp), jnp.float32),
        grid_spec=pltpu.PrefetchScalarGridSpec(
            num_scalar_prefetch=0,
            grid=(2, Cp // CB),
            in_specs=[
                pl.BlockSpec((None, Lp, CB), lambda d, j: (d, 0, j)),
                pl.BlockSpec((None, Lp, CB), lambda d, j: (d, 0, j)),
            ],
            out_specs=pl.BlockSpec((None, Lp, CB), lambda d, j: (d, 0, j)),
        ),
        compiler_params=pltpu.CompilerParams(
            dimension_semantics=("parallel", "parallel"),
            vmem_limit_bytes=32 * 1024 * 1024,
        ),
    )(h3, g3)

    out_f = out3[0, :L, :C].T.reshape(B, Hq, L)
    out_b = out3[1, :L, :C].T.reshape(B, Hq, L)
    return jnp.concatenate([out_f, out_b], axis=1)


# ----------------------------- pure-JAX reference ----------------------------
def _min_gru_ref(h, g):
    log_h_tilde = jnp.where(h < 0, h, jnp.log(jax.nn.relu(h) + 1.0))
    log_coeffs = -jax.nn.softplus(g)
    log_values = -jax.nn.softplus(-g) + log_h_tilde
    a_star = jnp.cumsum(log_coeffs, axis=-1)
    lcse = jax.lax.associative_scan(jnp.logaddexp, log_values - a_star, axis=-1)
    return jnp.exp(a_star + lcse)


def _mingru2_ref(x):
    B, H, L = x.shape
    Hq = H // 4
    fore_h, fore_g = x[:, :Hq], x[:, Hq:2 * Hq]
    back = x[:, 2 * Hq:][:, :, ::-1]
    back_h, back_g = back[:, :Hq], back[:, Hq:]
    out_f = _min_gru_ref(fore_h, fore_g)
    out_b = _min_gru_ref(back_h, back_g)[:, :, ::-1]
    return jnp.concatenate([out_f, out_b], axis=1)


# ----------------------------- main ------------------------------------------
if __name__ == "__main__":
    key = jax.random.PRNGKey(0)
    fwd = jax.jit(mingru2_forward)

    # (B, H, L): primary small config, plus one with time padding / multi-chunk
    for (B, H, L) in [(2, 32, 16), (1, 12, 40)]:
        key, sub = jax.random.split(key)
        x = jax.random.normal(sub, (B, H, L), dtype=jnp.float32)

        out = jax.block_until_ready(fwd(x))
        ref = _mingru2_ref(x)

        assert out.shape == (B, H // 2, L), out.shape
        max_err = float(jnp.max(jnp.abs(out - ref)))
        assert jnp.allclose(out, ref, atol=1e-5, rtol=1e-3), max_err

    print("KERNEL_OK")
</pallas_src>

<mosaic_0001>
module attributes {stable_mosaic.version = 11 : i64} {
  func.func @kernel(%arg0: i32, %arg1: i32, %arg2: memref<1x16x128xf32, #tpu.memory_space<vmem>>, %arg3: memref<1x16x128xf32, #tpu.memory_space<vmem>>, %arg4: memref<1x16x128xf32, #tpu.memory_space<vmem>>) attributes {dimension_semantics = [#tpu.dimension_semantics<parallel>, #tpu.dimension_semantics<parallel>], iteration_bounds = array<i64: 2, 1>, scalar_prefetch = 0 : i64, scratch_operands = 0 : i64, tpu.core_type = #tpu.core_type<tc>, window_params = [{transform_indices = @transform_0, window_bounds = array<i64: 1, 16, 128>}, {transform_indices = @transform_1, window_bounds = array<i64: 1, 16, 128>}, {transform_indices = @transform_2, window_bounds = array<i64: 1, 16, 128>}]} {
    %c0_i32 = arith.constant 0 : i32
    %0 = arith.cmpi eq, %arg0, %c0_i32 : i32
    %1 = tpu.iota {dimensions = array<i32: 0>} : vector<16x16xi32>
    %2 = tpu.iota {dimensions = array<i32: 1>} : vector<16x16xi32>
    %3 = arith.subi %1, %2 : vector<16x16xi32>
    %4 = arith.subi %2, %1 : vector<16x16xi32>
    %5 = arith.select %0, %3, %4 : vector<16x16xi32>
    %c0_i32_0 = arith.constant 0 : i32
    %6 = vector.broadcast %c0_i32_0 : i32 to vector<16x16xi32>
    %7 = arith.cmpi sge, %5, %6 : vector<16x16xi32>
    %cst = arith.constant 1.000000e+00 : f32
    %cst_1 = arith.constant 0.000000e+00 : f32
    %8 = vector.broadcast %cst : f32 to vector<16x16xf32>
    %9 = vector.broadcast %cst_1 : f32 to vector<16x16xf32>
    %10 = arith.select %7, %8, %9 : vector<16x16xi1>, vector<16x16xf32>
    %11 = tpu.iota {dimensions = array<i32: 0>} : vector<16x1xi32>
    %cst_2 = arith.constant 0.000000e+00 : f32
    %12 = vector.broadcast %cst_2 : f32 to vector<1x128xf32>
    %cst_3 = arith.constant -1.000000e+30 : f32
    %13 = vector.broadcast %cst_3 : f32 to vector<1x128xf32>
    %c0_i32_4 = arith.constant 0 : i32
    %c0_i32_5 = arith.constant 0 : i32
    %14 = arith.subi %c0_i32_5, %c0_i32_4 : i32
    %15 = arith.select %0, %c0_i32_4, %14 : i32
    %c16_i32 = arith.constant 16 : i32
    %16 = arith.muli %15, %c16_i32 : i32
    %17 = tpu.assume_multiple %16, 16 : i32
    %c0 = arith.constant 0 : index
    %18 = arith.index_cast %17 : i32 to index
    %c0_6 = arith.constant 0 : index
    %19 = vector.load %arg2[%c0, %18, %c0_6] : memref<1x16x128xf32, #tpu.memory_space<vmem>>, vector<1x16x128xf32>
    %20 = vector.shape_cast %19 : vector<1x16x128xf32> to vector<16x128xf32>
    %c0_7 = arith.constant 0 : index
    %21 = arith.index_cast %17 : i32 to index
    %c0_8 = arith.constant 0 : index
    %22 = vector.load %arg3[%c0_7, %21, %c0_8] : memref<1x16x128xf32, #tpu.memory_space<vmem>>, vector<1x16x128xf32>
    %23 = vector.shape_cast %22 : vector<1x16x128xf32> to vector<16x128xf32>
    %24 = vector.broadcast %17 : i32 to vector<16x1xi32>
    %25 = arith.addi %24, %11 : vector<16x1xi32>
    %c16_i32_9 = arith.constant 16 : i32
    %26 = vector.broadcast %c16_i32_9 : i32 to vector<16x1xi32>
    %27 = arith.cmpi slt, %25, %26 : vector<16x1xi32>
    %cst_10 = arith.constant 0.000000e+00 : f32
    %28 = vector.broadcast %cst_10 : f32 to vector<16x128xf32>
    %29 = arith.cmpf olt, %20, %28 : vector<16x128xf32>
    %cst_11 = arith.constant 0.000000e+00 : f32
    %30 = vector.broadcast %cst_11 : f32 to vector<16x128xf32>
    %31 = arith.maximumf %20, %30 : vector<16x128xf32>
    %32 = math.log1p %31 : vector<16x128xf32>
    %33 = arith.select %29, %20, %32 : vector<16x128xi1>, vector<16x128xf32>
    %34 = math.absf %23 : vector<16x128xf32>
    %cst_12 = arith.constant 0.000000e+00 : f32
    %35 = vector.broadcast %cst_12 : f32 to vector<16x128xf32>
    %36 = arith.subf %35, %34 : vector<16x128xf32>
    %37 = math.exp %36 : vector<16x128xf32>
    %38 = math.log1p %37 : vector<16x128xf32>
    %cst_13 = arith.constant 0.000000e+00 : f32
    %39 = vector.broadcast %cst_13 : f32 to vector<16x128xf32>
    %40 = arith.maximumf %23, %39 : vector<16x128xf32>
    %41 = arith.addf %40, %38 : vector<16x128xf32>
    %cst_14 = arith.constant 0.000000e+00 : f32
    %42 = vector.broadcast %cst_14 : f32 to vector<16x128xf32>
    %43 = arith.subf %42, %41 : vector<16x128xf32>
    %cst_15 = arith.constant 0.000000e+00 : f32
    %44 = vector.broadcast %cst_15 : f32 to vector<16x128xf32>
    %45 = arith.subf %44, %23 : vector<16x128xf32>
    %cst_16 = arith.constant 0.000000e+00 : f32
    %46 = vector.broadcast %cst_16 : f32 to vector<16x128xf32>
    %47 = arith.maximumf %45, %46 : vector<16x128xf32>
    %48 = arith.addf %47, %38 : vector<16x128xf32>
    %cst_17 = arith.constant 0.000000e+00 : f32
    %49 = vector.broadcast %cst_17 : f32 to vector<16x128xf32>
    %50 = arith.subf %49, %48 : vector<16x128xf32>
    %51 = arith.addf %50, %33 : vector<16x128xf32>
    %cst_18 = arith.constant 0.000000e+00 : f32
    %52 = vector.shape_cast %27 : vector<16x1xi1> to vector<16x1xi1>
    %53 = vector.broadcast %52 : vector<16x1xi1> to vector<16x128xi1>
    %54 = vector.broadcast %cst_18 : f32 to vector<16x128xf32>
    %55 = arith.select %53, %43, %54 : vector<16x128xi1>, vector<16x128xf32>
    %cst_19 = arith.constant dense<0.000000e+00> : vector<16x128xf32>
    %56 = tpu.matmul %10, %55, %cst_19 {dimension_numbers = #tpu.dot_dimension_numbers<[1], [0], [0], [1], [0, 0, 1, 1], [], []>, precision = #tpu.contract_precision<fp32>} : vector<16x16xf32>, vector<16x128xf32>, vector<16x128xf32> -> vector<16x128xf32>
    %57 = arith.subf %51, %56 : vector<16x128xf32>
    %cst_20 = arith.constant -1.000000e+30 : f32
    %58 = vector.shape_cast %27 : vector<16x1xi1> to vector<16x1xi1>
    %59 = vector.broadcast %58 : vector<16x1xi1> to vector<16x128xi1>
    %60 = vector.broadcast %cst_20 : f32 to vector<16x128xf32>
    %61 = arith.select %59, %57, %60 : vector<16x128xi1>, vector<16x128xf32>
    %cst_21 = arith.constant dense<0xFF800000> : vector<128xf32>
    %62 = vector.multi_reduction <maximumf>, %61, %cst_21 [0] : vector<16x128xf32> to vector<128xf32>
    %63 = vector.shape_cast %62 : vector<128xf32> to vector<1x128xf32>
    %64 = vector.broadcast %63 : vector<1x128xf32> to vector<16x128xf32>
    %65 = arith.subf %61, %64 : vector<16x128xf32>
    %66 = math.exp %65 : vector<16x128xf32>
    %cst_22 = arith.constant 0.000000e+00 : f32
    %67 = vector.shape_cast %27 : vector<16x1xi1> to vector<16x1xi1>
    %68 = vector.broadcast %67 : vector<16x1xi1> to vector<16x128xi1>
    %69 = vector.broadcast %cst_22 : f32 to vector<16x128xf32>
    %70 = arith.select %68, %66, %69 : vector<16x128xi1>, vector<16x128xf32>
    %cst_23 = arith.constant dense<0.000000e+00> : vector<16x128xf32>
    %71 = tpu.matmul %10, %70, %cst_23 {dimension_numbers = #tpu.dot_dimension_numbers<[1], [0], [0], [1], [0, 0, 1, 1], [], []>, precision = #tpu.contract_precision<fp32>} : vector<16x16xf32>, vector<16x128xf32>, vector<16x128xf32> -> vector<16x128xf32>
    %72 = math.log %71 : vector<16x128xf32>
    %73 = vector.broadcast %63 : vector<1x128xf32> to vector<16x128xf32>
    %74 = arith.addf %73, %72 : vector<16x128xf32>
    %75 = vector.broadcast %12 : vector<1x128xf32> to vector<16x128xf32>
    %76 = arith.subf %74, %75 : vector<16x128xf32>
    %77 = vector.broadcast %13 : vector<1x128xf32> to vector<16x128xf32>
    %78 = arith.maximumf %77, %76 : vector<16x128xf32>
    %79 = vector.broadcast %13 : vector<1x128xf32> to vector<16x128xf32>
    %80 = arith.subf %79, %76 : vector<16x128xf32>
    %81 = math.absf %80 : vector<16x128xf32>
    %cst_24 = arith.constant 0.000000e+00 : f32
    %82 = vector.broadcast %cst_24 : f32 to vector<16x128xf32>
    %83 = arith.subf %82, %81 : vector<16x128xf32>
    %84 = math.exp %83 : vector<16x128xf32>
    %85 = math.log1p %84 : vector<16x128xf32>
    %86 = arith.addf %78, %85 : vector<16x128xf32>
    %87 = vector.broadcast %12 : vector<1x128xf32> to vector<16x128xf32>
    %88 = arith.addf %87, %56 : vector<16x128xf32>
    %89 = arith.addf %88, %86 : vector<16x128xf32>
    %90 = math.exp %89 : vector<16x128xf32>
    %c0_25 = arith.constant 0 : index
    %91 = arith.index_cast %17 : i32 to index
    %c0_26 = arith.constant 0 : index
    %92 = vector.load %arg4[%c0_25, %91, %c0_26] : memref<1x16x128xf32, #tpu.memory_space<vmem>>, vector<1x16x128xf32>
    %93 = vector.shape_cast %92 : vector<1x16x128xf32> to vector<16x128xf32>
    %94 = vector.shape_cast %90 : vector<16x128xf32> to vector<1x16x128xf32>
    tpu.vector_store %arg4[%c0_25, %91, %c0_26], %94 {strides = array<i32>} : memref<1x16x128xf32, #tpu.memory_space<vmem>>, vector<1x16x128xf32>,
    %95 = vector.extract_strided_slice %56 {offsets = [15, 0], sizes = [1, 128], strides = [1, 1]} : vector<16x128xf32> to vector<1x128xf32>
    %96 = vector.extract_strided_slice %56 {offsets = [0, 0], sizes = [1, 128], strides = [1, 1]} : vector<16x128xf32> to vector<1x128xf32>
    %97 = arith.select %0, %95, %96 : vector<1x128xf32>
    %98 = vector.extract_strided_slice %86 {offsets = [15, 0], sizes = [1, 128], strides = [1, 1]} : vector<16x128xf32> to vector<1x128xf32>
    %99 = vector.extract_strided_slice %86 {offsets = [0, 0], sizes = [1, 128], strides = [1, 1]} : vector<16x128xf32> to vector<1x128xf32>
    %100 = arith.select %0, %98, %99 : vector<1x128xf32>
    %101 = arith.addf %12, %97 : vector<1x128xf32>
    %c1_i32 = arith.constant 1 : i32
    return
  }
  func.func @transform_0(%arg0: i32, %arg1: i32) -> (i32, i32, i32) {
    %c0_i32 = arith.constant 0 : i32
    %c0_i32_0 = arith.constant 0 : i32
    return %arg0, %c0_i32, %arg1 : i32, i32, i32
  }
  func.func @transform_1(%arg0: i32, %arg1: i32) -> (i32, i32, i32) {
    %c0_i32 = arith.constant 0 : i32
    %c0_i32_0 = arith.constant 0 : i32
    return %arg0, %c0_i32, %arg1 : i32, i32, i32
  }
  func.func @transform_2(%arg0: i32, %arg1: i32) -> (i32, i32, i32) {
    %c0_i32 = arith.constant 0 : i32
    %c0_i32_0 = arith.constant 0 : i32
    return %arg0, %c0_i32, %arg1 : i32, i32, i32
  }
}

</mosaic_0001>

<bundles_post_ra>
// kernel: mingru2_forward.1
= control target key start
LH: loop header
LB: loop body
LE: loop exit
PB: predicated region body
PF: predicated region fallthrough
CT: control target
= control target key end

     0   :  { %s1810_s9 = smov 0   ;;  %s1812_s10 = smov 0   ;;  %s1937_s0 = inlined_call_operand.vmem [shape: f32[2,16,128], index: 0, kind: input, shape index: {}]   ;;  %s1938_s1 = inlined_call_operand.vmem [shape: f32[2,16,128], index: 1, kind: input, shape index: {}]   ;;  %s1939_s2 = inlined_call_operand.vmem [shape: f32[2,16,128], index: 2, kind: output, shape index: {}]  }
   0x1   :  { %s1814_s11 = smov 0  }
   0x2 LB: > { %s24_s12 = sadd.s32 1, %s1788_s10  ;;  %p1489_p0 = scmp.ge.s32.totalorder %s1792_s11, 1  ;;  %s1792_s11 = sphi %s1814_s11, %s12_s11   ;;  %s1788_s10 = sphi %s1812_s10, %s1943_s10   ;;  %s1784_s9 = sphi %s1810_s9, %s1942_s9  }
   0x3   : > { %p26_p1 = scmp.ge.s32.totalorder %s24_s12, 2  ;;  %p146_p2 = scmp.lt.s32.totalorder %s1792_s11, 3 }
   0x5   : > { %s1945_s12 = smov (%p26_p1, %s24_s12), 0  ;;  %p147_p3 = pnand %p1489_p0, %p146_p2 }
   0x6   : > { %p182_p4 = scmp.lt.s32.totalorder (!%p147_p3), %s1784_s9, 1  ;;  %p206_p5 = scmp.eq.s32.totalorder (!%p147_p3), %s1784_s9, 0  ;;  %v207_v0 = vlaneseq (!%p147_p3)  ;;  %vm306_vm1 = vcmask (!%p147_p3), 130048   ;;  %v1794_v14 = vmov (!%p147_p3), 0.0  }
   0x7   : > { %150 = sbr.rel (%p147_p3) target bundleno = 679 (0x2a7), region = 28 }
   0x8   : > { %v208_v1 = vshrl.u32 (!%p147_p3), %v207_v0, 7  ;;  %v211_v2 = vand.u32 (!%p147_p3), 127, %v207_v0 }
   0xa   : > { %v212_v3 = vsub.s32 (!%p147_p3), %v208_v1, %v211_v2  ;;  %v214_v4 = vsub.s32 (!%p147_p3), %v211_v2, %v208_v1  ;;  %v209_v22 = vadd.s32 (!%p147_p3), 8, %v208_v1 }
   0xc   : > { %v213_v24 = vsub.s32 (!%p147_p3), %v209_v22, %v211_v2  ;;  %v215_v25 = vsub.s32 (!%p147_p3), %v211_v2, %v209_v22 }
   0xe   : > { %s1947_s9 = smov (!%p182_p4, %s1784_s9), 1 }
   0xf   : > { %s216_s13 = scalar_select %p206_p5, 1, 0 }
  0x10   : > { %s1828_s14 = sshll.u32 %s1947_s9, 4 }
  0x11   : > { %s197_s17 = scalar_lea.vmem %s1938_s1, %s1828_s14  ;;  %v217_v5 = vstv %s216_s13  ;;  %s189_s20 = scalar_lea.vmem %s1937_s0, %s1828_s14 }
  0x12   : > { %v1834_v6 = vld [vmem:[%s197_s17] sm:$0xff]  ;;  %v228_v7 = vld [vmem:[%s197_s17 + $0x8] sm:$0xff]  ;;  %vm1836_vm0 = vcmp.eq.s32.totalorder %v217_v5, 1  ;;  %s205_s23 = scalar_lea.vmem %s1939_s2, %s1828_s14 }
  0x13   : > { %v258_v9 = vand.u32 2147483647, %v1834_v6  ;;  %v259_v10 = vand.u32 2147483647, %v228_v7  ;;  %v219_v11 = vsel %vm1836_vm0, %v212_v3, %v214_v4  ;;  %v220_v30 = vsel %vm1836_vm0, %v213_v24, %v215_v25 }
  0x14   : > { %vm221_vm2 = vcmp.ge.s32.totalorder %v219_v11, 0  ;;  %vm222_vm3 = vcmp.ge.s32.totalorder %v220_v30, 0  ;;  %v291_v38 = vsub.f32 0.0, %v228_v7  ;;  %v284_v43 = vmax.f32 %v1834_v6, 0.0  ;;  %v226_v11 = vld [vmem:[%s189_s20 + $0x8] sm:$0xff] }
  0x15   : > { %v260_v12 = vsub.f32 0.0, %v258_v9  ;;  %v261_v13 = vsub.f32 0.0, %v259_v10  ;;  %v1843_v15 = vsel %vm221_vm2, 1.0, %v1794_v14  ;;  %v1856_v34 = vsel %vm222_vm3, 1.0, %v1794_v14 }
  0x16   : > { %v308_v18 = vsel %vm306_vm1, %v1843_v15, 0  ;;  %v311_v39 = vsel %vm306_vm1, %v1856_v34, 0  ;;  %v285_v44 = vmax.f32 %v228_v7, 0.0  ;;  %v293_v48 = vmax.f32 %v291_v38, 0.0 }
  0x17   : > { %v262_v16 = vmul.f32 1.442695, %v260_v12  ;;  %v264_v17 = vmul.f32 1.442695, %v261_v13  ;;  %v1847_v19 = vsub.f32 %v308_v18, %v308_v18  ;;  %v1861_v47 = vsub.f32 %v311_v39, %v311_v39  ;;  %v225_v12 = vld [vmem:[%s189_s20] sm:$0xff] }
  0x18   : > { %v237_v13 = vmax.f32 %v226_v11, 0.0  ;;  %v236_v14 = vmax.f32 %v225_v12, 0.0  ;;  %v290_v22 = vsub.f32 0.0, %v1834_v6  ;;  %vm235_vm8 = vcmp.lt.f32.partialorder %v226_v11, 0.0 }
  0x19   : > { %1738 = vpow2.f32 %v262_v16  ;;  %v1850_v20 = vand.u32 4294901760, %v1847_v19  ;;  %v1867_v54 = vand.u32 4294901760, %v1861_v47  ;;  %vm234_vm9 = vcmp.lt.f32.partialorder %v225_v12, 0.0 }
  0x1a   : > { %1740 = vpow2.f32 %v264_v17  ;;  %v247_v16 = vadd.f32 1.0, %v237_v13  ;;  %v238_v17 = vadd.f32 1.0, %v236_v14  ;;  %v250_v18 = vmul.f32 -0.5, %v237_v13 }
  0x1b   : > { %v383_v21 = vsub.f32 %v1847_v19, %v1850_v20  ;;  %v393_v60 = vsub.f32 %v1861_v47, %v1867_v54  ;;  %v253_v25 = vand.u32 2147483647, %v237_v13 }
  0x1d   : > { %v384_v23 = vand.u32 4294901760, %v383_v21  ;;  %v1873_v1 = vand.u32 4294901760, %v393_v60  ;;  %v241_v21 = vmul.f32 -0.5, %v236_v14  ;;  %vm254_vm6 = vcmp.lt.f32.partialorder %v253_v25, 0.0004427343 }
  0x1f   : > { %1565 = vmatprep.mubr.f32.mxu0 %v384_v23  ;;  %1607 = vmatprep.mubr.f32.mxu1 %v384_v23  ;;  %v251_v23 = vadd.f32 1.0, %v250_v18 }
  0x23   : > { %v1739_v26 = vpop.eup %1738 }
  0x24   : > { %v1741_v27 = vpop.eup %1740  ;;  %v266_v28 = vadd.f32 1.0, %v1739_v26  ;;  %v269_v31 = vmul.f32 -0.5, %v1739_v26  ;;  %v272_v35 = vand.u32 2147483647, %v1739_v26 }
  0x25   : > { %v275_v29 = vadd.f32 1.0, %v1741_v27  ;;  %v278_v32 = vmul.f32 -0.5, %v1741_v27  ;;  %v281_v37 = vand.u32 2147483647, %v1741_v27 }
  0x26   : > { %1742 = vlog2.f32 %v266_v28  ;;  %v270_v33 = vadd.f32 1.0, %v269_v31  ;;  %vm273_vm4 = vcmp.lt.f32.partialorder %v272_v35, 0.0004427343  ;;  %v244_v28 = vand.u32 2147483647, %v236_v14 }
  0x27   : > { %1744 = vlog2.f32 %v275_v29  ;;  %v279_v36 = vadd.f32 1.0, %v278_v32  ;;  %vm282_vm5 = vcmp.lt.f32.partialorder %v281_v37, 0.0004427343  ;;  %v292_v29 = vmax.f32 %v290_v22, 0.0 }
  0x28   : > { %v271_v40 = vmul.f32 %v1739_v26, %v270_v33  ;;  %1746 = vlog2.f32 %v247_v16  ;;  %v242_v26 = vadd.f32 1.0, %v241_v21  ;;  %v252_v31 = vmul.f32 %v251_v23, %v237_v13 }
  0x29   : > { %v280_v42 = vmul.f32 %v1741_v27, %v279_v36  ;;  %1748 = vlog2.f32 %v238_v17  ;;  %vm245_vm7 = vcmp.lt.f32.partialorder %v244_v28, 0.0004427343 }
  0x2a   : > { %v243_v33 = vmul.f32 %v242_v26, %v236_v14 }
  0x30   : > { %v1743_v41 = vpop.eup %1742 }
  0x31   : > { %v1745_v45 = vpop.eup %1744  ;;  %v268_v46 = vmul.f32 0.6931472, %v1743_v41 }
  0x32   : > { %v277_v49 = vmul.f32 0.6931472, %v1745_v45  ;;  %v1747_v24 = vpop.eup %1746 }
  0x33   : > { %v1863_v50 = vsel %vm273_vm4, %v271_v40, %v268_v46  ;;  %v1749_v27 = vpop.eup %1748  ;;  %v249_v30 = vmul.f32 0.6931472, %v1747_v24 }
  0x34   : > { %v283_v51 = vsel %vm282_vm5, %v280_v42, %v277_v49  ;;  %v286_v52 = vadd.f32 %v284_v43, %v1863_v50  ;;  %v240_v32 = vmul.f32 0.6931472, %v1749_v27  ;;  %v294_v35 = vadd.f32 %v292_v29, %v1863_v50 }
  0x35   : > { %v287_v53 = vadd.f32 %v285_v44, %v283_v51  ;;  %v1869_v55 = vadd.f32 %v293_v48, %v283_v51  ;;  %v255_v36 = vsel %vm254_vm6, %v252_v31, %v249_v30 }
  0x36   : > { %v288_v56 = vsub.f32 0.0, %v286_v52  ;;  %v246_v37 = vsel %vm245_vm7, %v243_v33, %v240_v32  ;;  %v257_v38 = vsel %vm235_vm8, %v226_v11, %v255_v36  ;;  %v296_v39 = vsub.f32 0.0, %v294_v35 }
  0x37   : > { %v289_v57 = vsub.f32 0.0, %v287_v53  ;;  %v297_v6 = vsub.f32 0.0, %v1869_v55  ;;  %v256_v40 = vsel %vm234_vm9, %v225_v12, %v246_v37 }
  0x38   : > { %v314_v58 = vand.u32 4294901760, %v288_v56  ;;  %v298_v42 = vadd.f32 %v296_v39, %v256_v40 }
  0x39   : > { %v317_v59 = vand.u32 4294901760, %v289_v57  ;;  %v299_v41 = vadd.f32 %v297_v6, %v257_v38 }
  0x3a   : > { %v402_v61 = vsub.f32 %v288_v56, %v314_v58 }
  0x3b   : > { %v1645_v62 = vpack.c.bf16 %v317_v59, %v314_v58  ;;  %v409_v63 = vsub.f32 %v289_v57, %v317_v59 }
  0x3c   : > { %v403_v0 = vand.u32 4294901760, %v402_v61 }
  0x3d   : > { %1646 = vmatprep.subr.bf16.mxu0 %v1645_v62  ;;  %v410_v2 = vand.u32 4294901760, %v409_v63  ;;  %v1653_v9 = vpack.c.bf16 %v409_v63, %v402_v61 }
  0x3e   : > { %1648 = vmatpush3.bf16.msra.mxu0 %v1645_v62  ;;  %v404_v3 = vsub.f32 %v402_v61, %v403_v0 }
  0x3f   : > { %v411_v4 = vsub.f32 %v409_v63, %v410_v2  ;;  %v1661_v10 = vpack.c.bf16 %v410_v2, %v403_v0 }
  0x40   : > { %v405_v5 = vand.u32 4294901760, %v404_v3 }
  0x41   : > { %1566 = vmatmul.mubr.f32.vlgmr.msra.gmra.mrb[0].mxu0 %v1873_v1  ;;  %v412_v7 = vand.u32 4294901760, %v411_v4 }
  0x42   : > { %1572 = vmatprep.mubr.msk.f32.mxu0 %vm306_vm1, %v1843_v15 }
  0x43   : > { %v1649_v8 = vpack.c.bf16 %v412_v7, %v405_v5 }
  0x45   : > { %1650 = vmatprep.subr.bf16.mxu0 %v1649_v8 }
  0x46   : > { %1652 = vmatpush3.bf16.msra.mxu0 %v1649_v8 }
  0x47   : > { %1654 = vmatprep.subr.bf16.mxu0 %v1653_v9 }
  0x49   : > { %1573 = vmatmul.mubr.msk.f32.vlgmr.msra.gmra.mrb[0].mxu0 %vm306_vm1, %v1856_v34 }
  0x4a   : > { %1656 = vmatpush3.bf16.msra.mxu0 %v1653_v9  ;;  %1579 = vmatprep.mubr.f32.mxu0 %v1847_v19 }
  0x4b   : > { %1658 = vmatprep.subr.bf16.mxu0 %v1645_v62 }
  0x51   : > { %1580 = vmatmul.mubr.f32.vlgmr.msra.gmra.mrb[0].mxu0 %v1861_v47 }
  0x52   : > { %1660 = vmatpush3.bf16.msra.mxu0 %v1645_v62  ;;  %1586 = vmatprep.mubr.f32.mxu0 %v1850_v20 }
  0x53   : > { %1662 = vmatprep.subr.bf16.mxu0 %v1661_v10 }
  0x59   : > { %1587 = vmatmul.mubr.f32.vlgmr.msra.gmra.mrb[0].mxu0 %v1867_v54 }
  0x5a   : > { %1664 = vmatpush3.bf16.msra.mxu0 %v1661_v10  ;;  %1593 = vmatprep.mubr.msk.f32.mxu0 %vm306_vm1, %v1843_v15 }
  0x5b   : > { %1666 = vmatprep.subr.bf16.mxu0 %v1645_v62 }
  0x61   : > { %1594 = vmatmul.mubr.msk.f32.vlgmr.msra.gmra.mrb[0].mxu0 %vm306_vm1, %v1856_v34 }
  0x62   : > { %1668 = vmatpush3.bf16.msra.mxu0 %v1645_v62  ;;  %1600 = vmatprep.mubr.msk.f32.mxu0 %vm306_vm1, %v1843_v15 }
  0x69   : > { %1601 = vmatmul.mubr.msk.f32.vlgmr.msra.gmra.mrb[0].mxu0 %vm306_vm1, %v1856_v34 }
 0x13c   : > { %v1899_v43 = vpop.f32.mrb[0].mxu0 }
 0x13d   : > { %v816_v44 = vsub.f32 %v299_v41, %v1899_v43  ;;  %v1902_v45 = vpop.f32.mrb[1].mxu0 }
 0x13e   : > { %v815_v46 = vsub.f32 %v298_v42, %v1902_v45 }
 0x140   : > { %v819_v48 = vmax.f32 %v815_v46, %v816_v44 }
 0x142   : > { %v820_v49 = vrot.slane %v819_v48, 4 }
 0x144   : > { %v821_v50 = vmax.f32 %v819_v48, %v820_v49 }
 0x146   : > { %v822_v51 = vrot.slane %v821_v50, 2 }
 0x148   : > { %v823_v52 = vmax.f32 %v821_v50, %v822_v51 }
 0x14a   : > { %v824_v53 = vrot.slane %v823_v52, 1 }
 0x14c   : > { %v825_v55 = vmax.f32 %v823_v52, %v824_v53 }
 0x14e   : > { %v826_v56 = vsub.f32 %v815_v46, %v825_v55  ;;  %v827_v57 = vsub.f32 %v816_v44, %v825_v55 }
 0x150   : > { %v828_v58 = vmul.f32 1.442695, %v826_v56  ;;  %v830_v59 = vmul.f32 1.442695, %v827_v57 }
 0x152   : > { %1750 = vpow2.f32 %v828_v58 }
 0x153   : > { %1752 = vpow2.f32 %v830_v59 }
 0x15c   : > { %v1751_v60 = vpop.eup %1750 }
 0x15d   : > { %v1753_v61 = vpop.eup %1752  ;;  %v835_v62 = vand.u32 4294901760, %v1751_v60 }
 0x15e   : > { %v838_v63 = vand.u32 4294901760, %v1753_v61 }
 0x15f   : > { %v923_v0 = vsub.f32 %v1751_v60, %v835_v62 }
 0x160   : > { %v1669_v2 = vpack.c.bf16 %v838_v63, %v835_v62  ;;  %v930_v3 = vsub.f32 %v1753_v61, %v838_v63 }
 0x161   : > { %v924_v4 = vand.u32 4294901760, %v923_v0 }
 0x162   : > { %1670 = vmatprep.subr.bf16.mxu1 %v1669_v2  ;;  %v931_v5 = vand.u32 4294901760, %v930_v3  ;;  %v1677_v7 = vpack.c.bf16 %v930_v3, %v923_v0 }
 0x163   : > { %1672 = vmatpush3.bf16.msra.mxu1 %v1669_v2  ;;  %v925_v8 = vsub.f32 %v923_v0, %v924_v4 }
 0x164   : > { %v932_v9 = vsub.f32 %v930_v3, %v931_v5  ;;  %v1685_v10 = vpack.c.bf16 %v931_v5, %v924_v4 }
 0x165   : > { %v926_v11 = vand.u32 4294901760, %v925_v8 }
 0x166   : > { %1608 = vmatmul.mubr.f32.vlgmr.msra.gmra.mrb[0].mxu1 %v1873_v1  ;;  %v933_v12 = vand.u32 4294901760, %v932_v9 }
 0x167   : > { %1614 = vmatprep.mubr.msk.f32.mxu1 %vm306_vm1, %v1843_v15 }
 0x168   : > { %v1673_v13 = vpack.c.bf16 %v933_v12, %v926_v11 }
 0x16a   : > { %1674 = vmatprep.subr.bf16.mxu1 %v1673_v13 }
 0x16b   : > { %1676 = vmatpush3.bf16.msra.mxu1 %v1673_v13 }
 0x16c   : > { %1678 = vmatprep.subr.bf16.mxu1 %v1677_v7 }
 0x16e   : > { %1615 = vmatmul.mubr.msk.f32.vlgmr.msra.gmra.mrb[0].mxu1 %vm306_vm1, %v1856_v34 }
 0x16f   : > { %1680 = vmatpush3.bf16.msra.mxu1 %v1677_v7  ;;  %1621 = vmatprep.mubr.f32.mxu1 %v1847_v19 }
 0x170   : > { %1682 = vmatprep.subr.bf16.mxu1 %v1669_v2 }
 0x176   : > { %1622 = vmatmul.mubr.f32.vlgmr.msra.gmra.mrb[0].mxu1 %v1861_v47 }
 0x177   : > { %1684 = vmatpush3.bf16.msra.mxu1 %v1669_v2  ;;  %1628 = vmatprep.mubr.f32.mxu1 %v1850_v20 }
 0x178   : > { %1686 = vmatprep.subr.bf16.mxu1 %v1685_v10 }
 0x17e   : > { %1629 = vmatmul.mubr.f32.vlgmr.msra.gmra.mrb[0].mxu1 %v1867_v54 }
 0x17f   : > { %1688 = vmatpush3.bf16.msra.mxu1 %v1685_v10  ;;  %1635 = vmatprep.mubr.msk.f32.mxu1 %vm306_vm1, %v1843_v15 }
 0x180   : > { %1690 = vmatprep.subr.bf16.mxu1 %v1669_v2 }
 0x186   : > { %1636 = vmatmul.mubr.msk.f32.vlgmr.msra.gmra.mrb[0].mxu1 %vm306_vm1, %v1856_v34 }
 0x187   : > { %1692 = vmatpush3.bf16.msra.mxu1 %v1669_v2  ;;  %1642 = vmatprep.mubr.msk.f32.mxu1 %vm306_vm1, %v1843_v15 }
 0x18e   : > { %1643 = vmatmul.mubr.msk.f32.vlgmr.msra.gmra.mrb[0].mxu1 %vm306_vm1, %v1856_v34 }
 0x261   : > { %v1644_v19 = vpop.f32.mrb[0].mxu1 }
 0x262   : > { %1754 = vlog2.f32 %v1644_v19  ;;  %v1326_v20 = vpop.f32.mrb[1].mxu1 }
 0x263   : > { %1756 = vlog2.f32 %v1326_v20 }
 0x26c   : > { %v1755_v47 = vpop.eup %1754 }
 0x26d   : > { %v1757_v54 = vpop.eup %1756  ;;  %v1339_v1 = vmul.f32 0.6931472, %v1755_v47 }
 0x26e   : > { %v1337_v14 = vmul.f32 0.6931472, %v1757_v54 }
 0x26f   : > { %v1341_v16 = vadd.f32 %v1339_v1, %v825_v55 }
 0x270   : > { %v1340_v17 = vadd.f32 %v1337_v14, %v825_v55 }
 0x271   : > { %v1345_v18 = vsub.f32 -1e+30, %v1341_v16  ;;  %v1343_v40 = vmax.f32 %v1341_v16, -1e+30 }
 0x272   : > { %v1344_v21 = vsub.f32 -1e+30, %v1340_v17  ;;  %v1342_v46 = vmax.f32 %v1340_v17, -1e+30 }
 0x273   : > { %v1347_v22 = vand.u32 2147483647, %v1345_v18 }
 0x274   : > { %v1346_v23 = vand.u32 2147483647, %v1344_v21 }
 0x275   : > { %v1349_v24 = vsub.f32 0.0, %v1347_v22 }
 0x276   : > { %v1348_v25 = vsub.f32 0.0, %v1346_v23 }
 0x277   : > { %v1352_v15 = vmul.f32 1.442695, %v1349_v24 }
 0x278   : > { %v1350_v26 = vmul.f32 1.442695, %v1348_v25 }
 0x279   : > { %1758 = vpow2.f32 %v1352_v15 }
 0x27a   : > { %1760 = vpow2.f32 %v1350_v26 }
 0x283   : > { %v1759_v34 = vpop.eup %1758 }
 0x284   : > { %v1761_v27 = vpop.eup %1760  ;;  %v1363_v28 = vadd.f32 1.0, %v1759_v34  ;;  %v1366_v30 = vmul.f32 -0.5, %v1759_v34  ;;  %v1369_v33 = vand.u32 2147483647, %v1759_v34 }
 0x285   : > { %v1354_v29 = vadd.f32 1.0, %v1761_v27  ;;  %v1357_v31 = vmul.f32 -0.5, %v1761_v27  ;;  %v1360_v36 = vand.u32 2147483647, %v1761_v27 }
 0x286   : > { %1762 = vlog2.f32 %v1363_v28  ;;  %v1367_v32 = vadd.f32 1.0, %v1366_v30  ;;  %vm1370_vm10 = vcmp.lt.f32.partialorder %v1369_v33, 0.0004427343 }
 0x287   : > { %1764 = vlog2.f32 %v1354_v29  ;;  %v1358_v35 = vadd.f32 1.0, %v1357_v31  ;;  %vm1361_vm11 = vcmp.lt.f32.partialorder %v1360_v36, 0.0004427343 }
 0x288   : > { %v1368_v39 = vmul.f32 %v1759_v34, %v1367_v32 }
 0x289   : > { %v1359_v42 = vmul.f32 %v1761_v27, %v1358_v35 }
 0x290   : > { %v1763_v37 = vpop.eup %1762 }
 0x291   : > { %v1765_v6 = vpop.eup %1764  ;;  %v1365_v38 = vmul.f32 0.6931472, %v1763_v37 }
 0x292   : > { %v1356_v41 = vmul.f32 0.6931472, %v1765_v6 }
 0x293   : > { %v1371_v44 = vsel %vm1370_vm10, %v1368_v39, %v1365_v38 }
 0x294   : > { %v1373_v48 = vadd.f32 %v1371_v44, %v1343_v40  ;;  %v1362_v49 = vsel %vm1361_vm11, %v1359_v42, %v1356_v41 }
 0x295   : > { %v1372_v50 = vadd.f32 %v1362_v49, %v1342_v46 }
 0x296   : > { %v1377_v51 = vadd.f32 %v1899_v43, %v1373_v48 }
 0x297   : > { %v1376_v52 = vadd.f32 %v1372_v50, %v1902_v45 }
 0x298   : > { %v1380_v53 = vmul.f32 1.442695, %v1377_v51 }
 0x299   : > { %v1378_v55 = vmul.f32 1.442695, %v1376_v52 }
 0x29a   : > { %1766 = vpow2.f32 %v1380_v53 }
 0x29b   : > { %1768 = vpow2.f32 %v1378_v55 }
 0x2a4   : > { %v1767_v56 = vpop.eup %1766 }
 0x2a5   : > { %v1769_v57 = vpop.eup %1768  ;;  %1383 = vst [vmem:[%s205_s23 + $0x8] sm:$0xff] %v1767_v56 }
 0x2a6   : > { %1382 = vst [vmem:[%s205_s23] sm:$0xff] %v1769_v57 }
 0x2a7 PF: > { %s12_s11 = sadd.s32 1, %s1792_s11   ;;  %s1942_s9 = smov %s1788_s10 }
 0x2a8   : > { %p9_p6 = scmp.ge.s32.totalorder %s12_s11, 4   ;;  %s1943_s10 = smov %s1945_s12 }
 0x2aa   :  { %11 = sbr.rel (!%p9_p6) target bundleno = 2 (0x2), region = 61 }

</bundles_post_ra>
